<compile_context>
chip_gen: v6e
topology: v6e:2x2x1
jax: 0.10.0
libtpu: 0.0.40
codegen_flags: <defaults>
</compile_context>

<pallas_src>
import functools
import math

import jax
import jax.numpy as jnp
import numpy as np
from jax.experimental import pallas as pl
from jax.experimental.pallas import tpu as pltpu

_LN_EPS = 1e-5


# ----------------------------------------------------------------------------
# In-kernel helpers (f32 elementwise math on the VPU)
# ----------------------------------------------------------------------------
def _layernorm(x, g, b):
    mu = jnp.mean(x, axis=-1, keepdims=True)
    var = jnp.mean(jnp.square(x - mu), axis=-1, keepdims=True)
    return (x - mu) * jax.lax.rsqrt(var + _LN_EPS) * g + b


# ----------------------------------------------------------------------------
# Kernel 1: x + Attention(LayerNorm(x))  for one batch element
# ----------------------------------------------------------------------------
def attn_block_kernel(x_ref, g_ref, b_ref, wqkv_ref, wo_ref, bo_ref, o_ref, *,
                      heads, dim_head, scale):
    x = x_ref[0]                                            # (N, D) f32
    xn = _layernorm(x, g_ref[...], b_ref[...])              # (N, D) f32

    # QKV projection: bf16 operands, f32 accumulation on the MXU.
    qkv = jnp.dot(xn.astype(jnp.bfloat16), wqkv_ref[...],
                  preferred_element_type=jnp.float32)       # (N, 3*inner) f32

    inner = heads * dim_head
    outs = []
    for h in range(heads):                                  # static unroll over heads
        lo = h * dim_head
        qh = qkv[:, lo:lo + dim_head]
        kh = qkv[:, inner + lo:inner + lo + dim_head]
        vh = qkv[:, 2 * inner + lo:2 * inner + lo + dim_head]

        # dots[i, j] = sum_d q[i, d] * k[j, d]   (contract last dims, no transpose)
        dots = jax.lax.dot_general(
            qh.astype(jnp.bfloat16), kh.astype(jnp.bfloat16),
            dimension_numbers=(((1,), (1,)), ((), ())),
            preferred_element_type=jnp.float32) * scale     # (N, N) f32

        dots = dots - jnp.max(dots, axis=-1, keepdims=True)
        e = jnp.exp(dots)
        attn = e * pl.reciprocal(jnp.sum(e, axis=-1, keepdims=True), approx=True)

        outs.append(jnp.dot(attn.astype(jnp.bfloat16), vh.astype(jnp.bfloat16),
                            preferred_element_type=jnp.float32))   # (N, dim_head)

    merged = jnp.concatenate(outs, axis=-1)                 # (N, inner) f32
    out = jnp.dot(merged.astype(jnp.bfloat16), wo_ref[...],
                  preferred_element_type=jnp.float32) + bo_ref[...]

    o_ref[0] = x + out                                      # residual add


def attn_block(x, gamma, beta, wqkv_bf16, wo_bf16, bo, *, heads, dim_head, scale):
    B, N, D = x.shape
    inner = heads * dim_head
    kernel = functools.partial(attn_block_kernel, heads=heads,
                               dim_head=dim_head, scale=scale)

    flops = int(2 * B * N * D * 3 * inner            # qkv projection
                + 4 * B * heads * N * N * dim_head   # qk^T and attn@v
                + 2 * B * N * inner * D)             # output projection
    transcendentals = int(B * heads * N * (N + 1))
    bytes_accessed = int(2 * B * N * D * 4           # x in, out
                         + (D * 3 * inner + inner * D) * 2   # bf16 weights
                         + 3 * D * 4)

    return pl.pallas_call(
        kernel,
        out_shape=jax.ShapeDtypeStruct((B, N, D), jnp.float32),
        grid_spec=pltpu.PrefetchScalarGridSpec(
            num_scalar_prefetch=0,
            grid=(B,),
            in_specs=[
                pl.BlockSpec((1, N, D), lambda b: (b, 0, 0)),        # x
                pl.BlockSpec((1, D), lambda b: (0, 0)),              # ln gamma
                pl.BlockSpec((1, D), lambda b: (0, 0)),              # ln beta
                pl.BlockSpec((D, 3 * inner), lambda b: (0, 0)),      # Wqkv (bf16)
                pl.BlockSpec((inner, D), lambda b: (0, 0)),          # Wout (bf16)
                pl.BlockSpec((1, D), lambda b: (0, 0)),              # bout
            ],
            out_specs=pl.BlockSpec((1, N, D), lambda b: (b, 0, 0)),
        ),
        compiler_params=pltpu.CompilerParams(dimension_semantics=("parallel",)),
        cost_estimate=pl.CostEstimate(flops=flops, transcendentals=transcendentals,
                                      bytes_accessed=bytes_accessed),
    )(x, gamma, beta, wqkv_bf16, wo_bf16, bo)


# ----------------------------------------------------------------------------
# Kernel 2: x + FeedForward(LayerNorm(x))  for one (batch, row-tile) slab
# ----------------------------------------------------------------------------
def ffn_block_kernel(x_ref, g_ref, b_ref, w1_ref, b1_ref, w2_ref, b2_ref, o_ref):
    x = x_ref[0]                                            # (TN, D) f32
    xn = _layernorm(x, g_ref[...], b_ref[...])

    h = jnp.dot(xn.astype(jnp.bfloat16), w1_ref[...],
                preferred_element_type=jnp.float32) + b1_ref[...]
    # GELU (tanh approximation; matches torch exact-erf GELU to ~3e-4 abs)
    h = 0.5 * h * (1.0 + jnp.tanh(0.7978845608028654 * (h + 0.044715 * h * h * h)))

    out = jnp.dot(h.astype(jnp.bfloat16), w2_ref[...],
                  preferred_element_type=jnp.float32) + b2_ref[...]

    o_ref[0] = x + out                                      # residual add


def ffn_block(x, gamma, beta, w1_bf16, b1, w2_bf16, b2):
    B, N, D = x.shape
    Dh = w1_bf16.shape[1]
    # sequence-tile axis (rows are independent); keep (8,128)-friendly
    TN = 128 if (N > 128 and N % 128 == 0) else N
    grid = (B, N // TN)

    flops = int(4 * B * N * D * Dh)
    transcendentals = int(B * N * Dh)
    bytes_accessed = int(2 * B * N * D * 4 + 2 * D * Dh * 2 + (2 * D + 2 * Dh) * 4)

    return pl.pallas_call(
        ffn_block_kernel,
        out_shape=jax.ShapeDtypeStruct((B, N, D), jnp.float32),
        grid_spec=pltpu.PrefetchScalarGridSpec(
            num_scalar_prefetch=0,
            grid=grid,
            in_specs=[
                pl.BlockSpec((1, TN, D), lambda b, t: (b, t, 0)),    # x
                pl.BlockSpec((1, D), lambda b, t: (0, 0)),           # ln gamma
                pl.BlockSpec((1, D), lambda b, t: (0, 0)),           # ln beta
                pl.BlockSpec((D, Dh), lambda b, t: (0, 0)),          # W1 (bf16)
                pl.BlockSpec((1, Dh), lambda b, t: (0, 0)),          # b1
                pl.BlockSpec((Dh, D), lambda b, t: (0, 0)),          # W2 (bf16)
                pl.BlockSpec((1, D), lambda b, t: (0, 0)),           # b2
            ],
            out_specs=pl.BlockSpec((1, TN, D), lambda b, t: (b, t, 0)),
        ),
        compiler_params=pltpu.CompilerParams(
            dimension_semantics=("parallel", "parallel")),
        cost_estimate=pl.CostEstimate(flops=flops, transcendentals=transcendentals,
                                      bytes_accessed=bytes_accessed),
    )(x, gamma, beta, w1_bf16, b1, w2_bf16, b2)


# ----------------------------------------------------------------------------
# Full Transformer forward (Pallas) and pure-JAX reference
# ----------------------------------------------------------------------------
def transformer_forward(x, params, *, heads, dim_head):
    dim = x.shape[-1]
    scale = float(dim) ** -0.5        # note: torch module uses dim**-0.5, not dim_head**-0.5
    for layer in params:
        x = attn_block(x, layer["ln1_g"], layer["ln1_b"],
                       layer["wqkv"].astype(jnp.bfloat16),
                       layer["wo"].astype(jnp.bfloat16),
                       layer["bo"],
                       heads=heads, dim_head=dim_head, scale=scale)
        x = ffn_block(x, layer["ln2_g"], layer["ln2_b"],
                      layer["w1"].astype(jnp.bfloat16), layer["b1"],
                      layer["w2"].astype(jnp.bfloat16), layer["b2"])
    return x


def _layernorm_ref(x, g, b):
    mu = x.mean(-1, keepdims=True)
    var = ((x - mu) ** 2).mean(-1, keepdims=True)
    return (x - mu) / jnp.sqrt(var + _LN_EPS) * g + b


def _attention_ref(x, wqkv, wo, bo, heads, dim_head, scale):
    B, N, _ = x.shape
    inner = heads * dim_head
    qkv = x @ wqkv
    q, k, v = jnp.split(qkv, 3, axis=-1)
    split = lambda t: t.reshape(B, N, heads, dim_head).transpose(0, 2, 1, 3)
    q, k, v = split(q), split(k), split(v)
    dots = jnp.einsum("bhid,bhjd->bhij", q, k) * scale
    attn = jax.nn.softmax(dots, axis=-1)
    out = jnp.einsum("bhij,bhjd->bhid", attn, v)
    out = out.transpose(0, 2, 1, 3).reshape(B, N, inner)
    return out @ wo + bo


def _ffn_ref(x, w1, b1, w2, b2):
    h = x @ w1 + b1
    h = 0.5 * h * (1.0 + jax.lax.erf(h / jnp.sqrt(2.0)))    # exact GELU (torch default)
    return h @ w2 + b2


def transformer_ref(x, params, *, heads, dim_head):
    dim = x.shape[-1]
    scale = float(dim) ** -0.5
    for layer in params:
        xn = _layernorm_ref(x, layer["ln1_g"], layer["ln1_b"])
        x = x + _attention_ref(xn, layer["wqkv"], layer["wo"], layer["bo"],
                               heads, dim_head, scale)
        xn = _layernorm_ref(x, layer["ln2_g"], layer["ln2_b"])
        x = x + _ffn_ref(xn, layer["w1"], layer["b1"], layer["w2"], layer["b2"])
    return x


# ----------------------------------------------------------------------------
if __name__ == "__main__":
    B, N, dim = 2, 8, 32
    heads, dim_head, mlp_dim, depth = 4, 8, 64, 2
    inner = heads * dim_head

    key = jax.random.PRNGKey(0)
    key, xk = jax.random.split(key)
    x = jax.random.normal(xk, (B, N, dim), dtype=jnp.float32)

    def uni(k, shape, fan_in):
        bound = 1.0 / math.sqrt(fan_in)
        return jax.random.uniform(k, shape, jnp.float32, -bound, bound)

    params = []
    for _ in range(depth):
        key, *ks = jax.random.split(key, 8)
        params.append(dict(
            ln1_g=jnp.ones((1, dim), jnp.float32),
            ln1_b=jnp.zeros((1, dim), jnp.float32),
            wqkv=uni(ks[0], (dim, 3 * inner), dim),          # to_qkv (bias=False)
            wo=uni(ks[1], (inner, dim), inner),              # to_out Linear
            bo=uni(ks[2], (1, dim), inner),
            ln2_g=jnp.ones((1, dim), jnp.float32),
            ln2_b=jnp.zeros((1, dim), jnp.float32),
            w1=uni(ks[3], (dim, mlp_dim), dim),
            b1=uni(ks[4], (1, mlp_dim), dim),
            w2=uni(ks[5], (mlp_dim, dim), mlp_dim),
            b2=uni(ks[6], (1, dim), mlp_dim),
        ))

    out = transformer_forward(x, params, heads=heads, dim_head=dim_head)
    out = jax.block_until_ready(out)

    ref = transformer_ref(x, params, heads=heads, dim_head=dim_head)
    np.testing.assert_allclose(np.asarray(out), np.asarray(ref),
                               rtol=5e-2, atol=5e-2)
    print("KERNEL_OK")
</pallas_src>

<mosaic_0001>
module attributes {stable_mosaic.version = 11 : i64} {
  func.func @attn_block_kernel(%arg0: i32, %arg1: memref<1x8x32xf32, #tpu.memory_space<vmem>>, %arg2: memref<1x32xf32, #tpu.memory_space<vmem>>, %arg3: memref<1x32xf32, #tpu.memory_space<vmem>>, %arg4: memref<32x96xbf16, #tpu.memory_space<vmem>>, %arg5: memref<32x32xbf16, #tpu.memory_space<vmem>>, %arg6: memref<1x32xf32, #tpu.memory_space<vmem>>, %arg7: memref<1x8x32xf32, #tpu.memory_space<vmem>>) attributes {dimension_semantics = [#tpu.dimension_semantics<parallel>], iteration_bounds = array<i64: 2>, scalar_prefetch = 0 : i64, scratch_operands = 0 : i64, tpu.core_type = #tpu.core_type<tc>, window_params = [{transform_indices = @transform_0, window_bounds = array<i64: 1, 8, 32>}, {pipeline_mode = #tpu.pipeline_mode<synchronous>, transform_indices = @transform_1, window_bounds = array<i64: 1, 32>}, {pipeline_mode = #tpu.pipeline_mode<synchronous>, transform_indices = @transform_2, window_bounds = array<i64: 1, 32>}, {pipeline_mode = #tpu.pipeline_mode<synchronous>, transform_indices = @transform_3, window_bounds = array<i64: 32, 96>}, {pipeline_mode = #tpu.pipeline_mode<synchronous>, transform_indices = @transform_4, window_bounds = array<i64: 32, 32>}, {pipeline_mode = #tpu.pipeline_mode<synchronous>, transform_indices = @transform_5, window_bounds = array<i64: 1, 32>}, {transform_indices = @transform_6, window_bounds = array<i64: 1, 8, 32>}]} {
    %c0 = arith.constant 0 : index
    %c0_0 = arith.constant 0 : index
    %c0_1 = arith.constant 0 : index
    %0 = vector.load %arg1[%c0, %c0_0, %c0_1] : memref<1x8x32xf32, #tpu.memory_space<vmem>>, vector<1x8x32xf32>
    %1 = vector.shape_cast %0 : vector<1x8x32xf32> to vector<8x32xf32>
    %c0_2 = arith.constant 0 : index
    %c0_3 = arith.constant 0 : index
    %2 = vector.load %arg2[%c0_2, %c0_3] : memref<1x32xf32, #tpu.memory_space<vmem>>, vector<1x32xf32>
    %c0_4 = arith.constant 0 : index
    %c0_5 = arith.constant 0 : index
    %3 = vector.load %arg3[%c0_4, %c0_5] : memref<1x32xf32, #tpu.memory_space<vmem>>, vector<1x32xf32>
    %cst = arith.constant dense<0.000000e+00> : vector<8xf32>
    %4 = vector.multi_reduction <add>, %1, %cst [1] : vector<8x32xf32> to vector<8xf32>
    %5 = vector.shape_cast %4 : vector<8xf32> to vector<8x1xf32>
    %cst_6 = arith.constant 3.200000e+01 : f32
    %6 = vector.broadcast %cst_6 : f32 to vector<8x1xf32>
    %7 = arith.divf %5, %6 : vector<8x1xf32>
    %8 = vector.broadcast %7 : vector<8x1xf32> to vector<8x32xf32>
    %9 = arith.subf %1, %8 : vector<8x32xf32>
    %10 = arith.mulf %9, %9 : vector<8x32xf32>
    %cst_7 = arith.constant dense<0.000000e+00> : vector<8xf32>
    %11 = vector.multi_reduction <add>, %10, %cst_7 [1] : vector<8x32xf32> to vector<8xf32>
    %12 = vector.shape_cast %11 : vector<8xf32> to vector<8x1xf32>
    %cst_8 = arith.constant 3.200000e+01 : f32
    %13 = vector.broadcast %cst_8 : f32 to vector<8x1xf32>
    %14 = arith.divf %12, %13 : vector<8x1xf32>
    %15 = vector.broadcast %7 : vector<8x1xf32> to vector<8x32xf32>
    %16 = arith.subf %1, %15 : vector<8x32xf32>
    %cst_9 = arith.constant 9.99999974E-6 : f32
    %17 = vector.broadcast %cst_9 : f32 to vector<8x1xf32>
    %18 = arith.addf %14, %17 : vector<8x1xf32>
    %19 = math.rsqrt %18 : vector<8x1xf32>
    %20 = vector.broadcast %19 : vector<8x1xf32> to vector<8x32xf32>
    %21 = arith.mulf %16, %20 : vector<8x32xf32>
    %22 = vector.broadcast %2 : vector<1x32xf32> to vector<8x32xf32>
    %23 = arith.mulf %21, %22 : vector<8x32xf32>
    %24 = vector.broadcast %3 : vector<1x32xf32> to vector<8x32xf32>
    %25 = arith.addf %23, %24 : vector<8x32xf32>
    %26 = arith.truncf %25 : vector<8x32xf32> to vector<8x32xbf16>
    %c0_10 = arith.constant 0 : index
    %c0_11 = arith.constant 0 : index
    %27 = vector.load %arg4[%c0_10, %c0_11] : memref<32x96xbf16, #tpu.memory_space<vmem>>, vector<32x96xbf16>
    %cst_12 = arith.constant dense<0.000000e+00> : vector<8x96xf32>
    %28 = tpu.matmul %26, %27, %cst_12 {dimension_numbers = #tpu.dot_dimension_numbers<[1], [0], [0], [1], [0, 0, 1, 1], [], []>} : vector<8x32xbf16>, vector<32x96xbf16>, vector<8x96xf32> -> vector<8x96xf32>
    %29 = vector.extract_strided_slice %28 {offsets = [0, 0], sizes = [8, 8], strides = [1, 1]} : vector<8x96xf32> to vector<8x8xf32>
    %30 = vector.extract_strided_slice %28 {offsets = [0, 32], sizes = [8, 8], strides = [1, 1]} : vector<8x96xf32> to vector<8x8xf32>
    %31 = vector.extract_strided_slice %28 {offsets = [0, 64], sizes = [8, 8], strides = [1, 1]} : vector<8x96xf32> to vector<8x8xf32>
    %32 = arith.truncf %29 : vector<8x8xf32> to vector<8x8xbf16>
    %33 = arith.truncf %30 : vector<8x8xf32> to vector<8x8xbf16>
    %cst_13 = arith.constant dense<0.000000e+00> : vector<8x8xf32>
    %34 = tpu.matmul %32, %33, %cst_13 {dimension_numbers = #tpu.dot_dimension_numbers<[1], [1], [0], [0], [0, 0, 1, 0], [], []>} : vector<8x8xbf16>, vector<8x8xbf16>, vector<8x8xf32> -> vector<8x8xf32>
    %cst_14 = arith.constant 0.176776692 : f32
    %35 = vector.broadcast %cst_14 : f32 to vector<8x8xf32>
    %36 = arith.mulf %34, %35 : vector<8x8xf32>
    %cst_15 = arith.constant dense<0xFF800000> : vector<8xf32>
    %37 = vector.multi_reduction <maximumf>, %36, %cst_15 [1] : vector<8x8xf32> to vector<8xf32>
    %38 = vector.shape_cast %37 : vector<8xf32> to vector<8x1xf32>
    %39 = vector.broadcast %38 : vector<8x1xf32> to vector<8x8xf32>
    %40 = arith.subf %36, %39 : vector<8x8xf32>
    %41 = math.exp %40 : vector<8x8xf32>
    %cst_16 = arith.constant dense<0.000000e+00> : vector<8xf32>
    %42 = vector.multi_reduction <add>, %41, %cst_16 [1] : vector<8x8xf32> to vector<8xf32>
    %43 = vector.shape_cast %42 : vector<8xf32> to vector<8x1xf32>
    %44 = tpu.reciprocal %43 {approx = true} : vector<8x1xf32> -> vector<8x1xf32>
    %45 = vector.broadcast %44 : vector<8x1xf32> to vector<8x8xf32>
    %46 = arith.mulf %41, %45 : vector<8x8xf32>
    %47 = arith.truncf %46 : vector<8x8xf32> to vector<8x8xbf16>
    %48 = arith.truncf %31 : vector<8x8xf32> to vector<8x8xbf16>
    %cst_17 = arith.constant dense<0.000000e+00> : vector<8x8xf32>
    %49 = tpu.matmul %47, %48, %cst_17 {dimension_numbers = #tpu.dot_dimension_numbers<[1], [0], [0], [1], [0, 0, 1, 1], [], []>} : vector<8x8xbf16>, vector<8x8xbf16>, vector<8x8xf32> -> vector<8x8xf32>
    %50 = vector.extract_strided_slice %28 {offsets = [0, 8], sizes = [8, 8], strides = [1, 1]} : vector<8x96xf32> to vector<8x8xf32>
    %51 = vector.extract_strided_slice %28 {offsets = [0, 40], sizes = [8, 8], strides = [1, 1]} : vector<8x96xf32> to vector<8x8xf32>
    %52 = vector.extract_strided_slice %28 {offsets = [0, 72], sizes = [8, 8], strides = [1, 1]} : vector<8x96xf32> to vector<8x8xf32>
    %53 = arith.truncf %50 : vector<8x8xf32> to vector<8x8xbf16>
    %54 = arith.truncf %51 : vector<8x8xf32> to vector<8x8xbf16>
    %cst_18 = arith.constant dense<0.000000e+00> : vector<8x8xf32>
    %55 = tpu.matmul %53, %54, %cst_18 {dimension_numbers = #tpu.dot_dimension_numbers<[1], [1], [0], [0], [0, 0, 1, 0], [], []>} : vector<8x8xbf16>, vector<8x8xbf16>, vector<8x8xf32> -> vector<8x8xf32>
    %cst_19 = arith.constant 0.176776692 : f32
    %56 = vector.broadcast %cst_19 : f32 to vector<8x8xf32>
    %57 = arith.mulf %55, %56 : vector<8x8xf32>
    %cst_20 = arith.constant dense<0xFF800000> : vector<8xf32>
    %58 = vector.multi_reduction <maximumf>, %57, %cst_20 [1] : vector<8x8xf32> to vector<8xf32>
    %59 = vector.shape_cast %58 : vector<8xf32> to vector<8x1xf32>
    %60 = vector.broadcast %59 : vector<8x1xf32> to vector<8x8xf32>
    %61 = arith.subf %57, %60 : vector<8x8xf32>
    %62 = math.exp %61 : vector<8x8xf32>
    %cst_21 = arith.constant dense<0.000000e+00> : vector<8xf32>
    %63 = vector.multi_reduction <add>, %62, %cst_21 [1] : vector<8x8xf32> to vector<8xf32>
    %64 = vector.shape_cast %63 : vector<8xf32> to vector<8x1xf32>
    %65 = tpu.reciprocal %64 {approx = true} : vector<8x1xf32> -> vector<8x1xf32>
    %66 = vector.broadcast %65 : vector<8x1xf32> to vector<8x8xf32>
    %67 = arith.mulf %62, %66 : vector<8x8xf32>
    %68 = arith.truncf %67 : vector<8x8xf32> to vector<8x8xbf16>
    %69 = arith.truncf %52 : vector<8x8xf32> to vector<8x8xbf16>
    %cst_22 = arith.constant dense<0.000000e+00> : vector<8x8xf32>
    %70 = tpu.matmul %68, %69, %cst_22 {dimension_numbers = #tpu.dot_dimension_numbers<[1], [0], [0], [1], [0, 0, 1, 1], [], []>} : vector<8x8xbf16>, vector<8x8xbf16>, vector<8x8xf32> -> vector<8x8xf32>
    %71 = vector.extract_strided_slice %28 {offsets = [0, 16], sizes = [8, 8], strides = [1, 1]} : vector<8x96xf32> to vector<8x8xf32>
    %72 = vector.extract_strided_slice %28 {offsets = [0, 48], sizes = [8, 8], strides = [1, 1]} : vector<8x96xf32> to vector<8x8xf32>
    %73 = vector.extract_strided_slice %28 {offsets = [0, 80], sizes = [8, 8], strides = [1, 1]} : vector<8x96xf32> to vector<8x8xf32>
    %74 = arith.truncf %71 : vector<8x8xf32> to vector<8x8xbf16>
    %75 = arith.truncf %72 : vector<8x8xf32> to vector<8x8xbf16>
    %cst_23 = arith.constant dense<0.000000e+00> : vector<8x8xf32>
    %76 = tpu.matmul %74, %75, %cst_23 {dimension_numbers = #tpu.dot_dimension_numbers<[1], [1], [0], [0], [0, 0, 1, 0], [], []>} : vector<8x8xbf16>, vector<8x8xbf16>, vector<8x8xf32> -> vector<8x8xf32>
    %cst_24 = arith.constant 0.176776692 : f32
    %77 = vector.broadcast %cst_24 : f32 to vector<8x8xf32>
    %78 = arith.mulf %76, %77 : vector<8x8xf32>
    %cst_25 = arith.constant dense<0xFF800000> : vector<8xf32>
    %79 = vector.multi_reduction <maximumf>, %78, %cst_25 [1] : vector<8x8xf32> to vector<8xf32>
    %80 = vector.shape_cast %79 : vector<8xf32> to vector<8x1xf32>
    %81 = vector.broadcast %80 : vector<8x1xf32> to vector<8x8xf32>
    %82 = arith.subf %78, %81 : vector<8x8xf32>
    %83 = math.exp %82 : vector<8x8xf32>
    %cst_26 = arith.constant dense<0.000000e+00> : vector<8xf32>
    %84 = vector.multi_reduction <add>, %83, %cst_26 [1] : vector<8x8xf32> to vector<8xf32>
    %85 = vector.shape_cast %84 : vector<8xf32> to vector<8x1xf32>
    %86 = tpu.reciprocal %85 {approx = true} : vector<8x1xf32> -> vector<8x1xf32>
    %87 = vector.broadcast %86 : vector<8x1xf32> to vector<8x8xf32>
    %88 = arith.mulf %83, %87 : vector<8x8xf32>
    %89 = arith.truncf %88 : vector<8x8xf32> to vector<8x8xbf16>
    %90 = arith.truncf %73 : vector<8x8xf32> to vector<8x8xbf16>
    %cst_27 = arith.constant dense<0.000000e+00> : vector<8x8xf32>
    %91 = tpu.matmul %89, %90, %cst_27 {dimension_numbers = #tpu.dot_dimension_numbers<[1], [0], [0], [1], [0, 0, 1, 1], [], []>} : vector<8x8xbf16>, vector<8x8xbf16>, vector<8x8xf32> -> vector<8x8xf32>
    %92 = vector.extract_strided_slice %28 {offsets = [0, 24], sizes = [8, 8], strides = [1, 1]} : vector<8x96xf32> to vector<8x8xf32>
    %93 = vector.extract_strided_slice %28 {offsets = [0, 56], sizes = [8, 8], strides = [1, 1]} : vector<8x96xf32> to vector<8x8xf32>
    %94 = vector.extract_strided_slice %28 {offsets = [0, 88], sizes = [8, 8], strides = [1, 1]} : vector<8x96xf32> to vector<8x8xf32>
    %95 = arith.truncf %92 : vector<8x8xf32> to vector<8x8xbf16>
    %96 = arith.truncf %93 : vector<8x8xf32> to vector<8x8xbf16>
    %cst_28 = arith.constant dense<0.000000e+00> : vector<8x8xf32>
    %97 = tpu.matmul %95, %96, %cst_28 {dimension_numbers = #tpu.dot_dimension_numbers<[1], [1], [0], [0], [0, 0, 1, 0], [], []>} : vector<8x8xbf16>, vector<8x8xbf16>, vector<8x8xf32> -> vector<8x8xf32>
    %cst_29 = arith.constant 0.176776692 : f32
    %98 = vector.broadcast %cst_29 : f32 to vector<8x8xf32>
    %99 = arith.mulf %97, %98 : vector<8x8xf32>
    %cst_30 = arith.constant dense<0xFF800000> : vector<8xf32>
    %100 = vector.multi_reduction <maximumf>, %99, %cst_30 [1] : vector<8x8xf32> to vector<8xf32>
    %101 = vector.shape_cast %100 : vector<8xf32> to vector<8x1xf32>
    %102 = vector.broadcast %101 : vector<8x1xf32> to vector<8x8xf32>
    %103 = arith.subf %99, %102 : vector<8x8xf32>
    %104 = math.exp %103 : vector<8x8xf32>
    %cst_31 = arith.constant dense<0.000000e+00> : vector<8xf32>
    %105 = vector.multi_reduction <add>, %104, %cst_31 [1] : vector<8x8xf32> to vector<8xf32>
    %106 = vector.shape_cast %105 : vector<8xf32> to vector<8x1xf32>
    %107 = tpu.reciprocal %106 {approx = true} : vector<8x1xf32> -> vector<8x1xf32>
    %108 = vector.broadcast %107 : vector<8x1xf32> to vector<8x8xf32>
    %109 = arith.mulf %104, %108 : vector<8x8xf32>
    %110 = arith.truncf %109 : vector<8x8xf32> to vector<8x8xbf16>
    %111 = arith.truncf %94 : vector<8x8xf32> to vector<8x8xbf16>
    %cst_32 = arith.constant dense<0.000000e+00> : vector<8x8xf32>
    %112 = tpu.matmul %110, %111, %cst_32 {dimension_numbers = #tpu.dot_dimension_numbers<[1], [0], [0], [1], [0, 0, 1, 1], [], []>} : vector<8x8xbf16>, vector<8x8xbf16>, vector<8x8xf32> -> vector<8x8xf32>
    %113 = tpu.concatenate %49, %70, %91, %112 in 1 : vector<8x8xf32>, vector<8x8xf32>, vector<8x8xf32>, vector<8x8xf32> -> vector<8x32xf32>
    %114 = arith.truncf %113 : vector<8x32xf32> to vector<8x32xbf16>
    %c0_33 = arith.constant 0 : index
    %c0_34 = arith.constant 0 : index
    %115 = vector.load %arg5[%c0_33, %c0_34] : memref<32x32xbf16, #tpu.memory_space<vmem>>, vector<32x32xbf16>
    %cst_35 = arith.constant dense<0.000000e+00> : vector<8x32xf32>
    %116 = tpu.matmul %114, %115, %cst_35 {dimension_numbers = #tpu.dot_dimension_numbers<[1], [0], [0], [1], [0, 0, 1, 1], [], []>} : vector<8x32xbf16>, vector<32x32xbf16>, vector<8x32xf32> -> vector<8x32xf32>
    %c0_36 = arith.constant 0 : index
    %c0_37 = arith.constant 0 : index
    %117 = vector.load %arg6[%c0_36, %c0_37] : memref<1x32xf32, #tpu.memory_space<vmem>>, vector<1x32xf32>
    %118 = vector.broadcast %117 : vector<1x32xf32> to vector<8x32xf32>
    %119 = arith.addf %116, %118 : vector<8x32xf32>
    %120 = arith.addf %1, %119 : vector<8x32xf32>
    %c0_38 = arith.constant 0 : index
    %c0_39 = arith.constant 0 : index
    %c0_40 = arith.constant 0 : index
    %121 = vector.load %arg7[%c0_38, %c0_39, %c0_40] : memref<1x8x32xf32, #tpu.memory_space<vmem>>, vector<1x8x32xf32>
    %122 = vector.shape_cast %121 : vector<1x8x32xf32> to vector<8x32xf32>
    %123 = vector.shape_cast %120 : vector<8x32xf32> to vector<1x8x32xf32>
    tpu.vector_store %arg7[%c0_38, %c0_39, %c0_40], %123 {strides = array<i32>} : memref<1x8x32xf32, #tpu.memory_space<vmem>>, vector<1x8x32xf32>,
    return
  }
  func.func @transform_0(%arg0: i32) -> (i32, i32, i32) {
    %c0_i32 = arith.constant 0 : i32
    %c0_i32_0 = arith.constant 0 : i32
    %c0_i32_1 = arith.constant 0 : i32
    return %arg0, %c0_i32, %c0_i32_0 : i32, i32, i32
  }
  func.func @transform_1(%arg0: i32) -> (i32, i32) {
    %c0_i32 = arith.constant 0 : i32
    %c0_i32_0 = arith.constant 0 : i32
    %c0_i32_1 = arith.constant 0 : i32
    return %c0_i32, %c0_i32_0 : i32, i32
  }
  func.func @transform_2(%arg0: i32) -> (i32, i32) {
    %c0_i32 = arith.constant 0 : i32
    %c0_i32_0 = arith.constant 0 : i32
    %c0_i32_1 = arith.constant 0 : i32
    return %c0_i32, %c0_i32_0 : i32, i32
  }
  func.func @transform_3(%arg0: i32) -> (i32, i32) {
    %c0_i32 = arith.constant 0 : i32
    %c0_i32_0 = arith.constant 0 : i32
    %c0_i32_1 = arith.constant 0 : i32
    return %c0_i32, %c0_i32_0 : i32, i32
  }
  func.func @transform_4(%arg0: i32) -> (i32, i32) {
    %c0_i32 = arith.constant 0 : i32
    %c0_i32_0 = arith.constant 0 : i32
    %c0_i32_1 = arith.constant 0 : i32
    return %c0_i32, %c0_i32_0 : i32, i32
  }
  func.func @transform_5(%arg0: i32) -> (i32, i32) {
    %c0_i32 = arith.constant 0 : i32
    %c0_i32_0 = arith.constant 0 : i32
    %c0_i32_1 = arith.constant 0 : i32
    return %c0_i32, %c0_i32_0 : i32, i32
  }
  func.func @transform_6(%arg0: i32) -> (i32, i32, i32) {
    %c0_i32 = arith.constant 0 : i32
    %c0_i32_0 = arith.constant 0 : i32
    %c0_i32_1 = arith.constant 0 : i32
    return %arg0, %c0_i32, %c0_i32_0 : i32, i32, i32
  }
}

</mosaic_0001>

<bundles_post_ra>
// kernel: tpu_custom_call.1
= control target key start
LH: loop header
LB: loop body
LE: loop exit
PB: predicated region body
PF: predicated region fallthrough
CT: control target
= control target key end

     0   :  { %s1728_s0 = inlined_call_operand.hbm [shape: f32[2,8,32], index: 0, kind: input, shape index: {}]   ;;  %s1729_s1 = inlined_call_operand.vmem [shape: f32[1,32], index: 1, kind: input, shape index: {}]   ;;  %s1730_s2 = inlined_call_operand.vmem [shape: f32[1,32], index: 2, kind: input, shape index: {}]   ;;  %s1731_s3 = inlined_call_operand.hbm [shape: bf16[32,96], index: 3, kind: input, shape index: {}]   ;;  %s1732_s4 = inlined_call_operand.hbm [shape: bf16[32,32], index: 4, kind: input, shape index: {}]   ;;  %s1733_s5 = inlined_call_operand.vmem [shape: f32[1,32], index: 5, kind: input, shape index: {}]   ;;  %s1734_s6 = inlined_call_operand.hbm [shape: f32[2,8,32], index: 6, kind: output, shape index: {}]  }
   0x1   :  { %1739 = sst [smem:[#allocation12_spill]] %s1731_s3 }
   0x2   :  { %11 = vsyncpa [#allocation3], 0 }
   0x3   :  { %13 = vsyncpa [#allocation3 + $0x1], 0 }
   0x4   :  { %14 = vsyncpa [#allocation6], 0 }
   0x5   :  { %15 = vsyncpa [#allocation4], 0 }
   0x6   :  { %17 = vsyncpa [#allocation4 + $0x1], 0  ;;  %s1457_s21 = smov 0   ;;  %s1459_s22 = smov 0  }
   0x7   :  { %s1461_s23 = smov 0   ;;  %s1463_s24 = smov 0  }
   0x8 LB: > { %s1478_s25 = sadd.s32 4294967295, %s1398_s24   ;;  %s1024_s26 = sadd.s32 4294967294, %s1398_s24   ;;  %s1398_s24 = sphi %s1463_s24, %s1758_s24   ;;  %s1394_s23 = sphi %s1461_s23, %s1757_s23   ;;  %s1390_s22 = sphi %s1459_s22, %s1756_s22   ;;  %s1386_s21 = sphi %s1457_s21, %s1755_s21  }
   0x9   : > { %p43_p0 = scmp.ne.s32.totalorder %s1390_s22, %s1386_s21  ;;  %p1735_p1 = scmp.eq.s32.totalorder %s1478_s25, 0 }
   0xa   : > { %p178_p3 = scmp.eq.s32.totalorder %s1024_s26, 1  ;;  %p1025_p5 = scmp.ge.s32.totalorder %s1398_s24, 1 }
   0xb   : > { %p1487_p4 = por %p1735_p1, %p43_p0  ;;  %p185_p7 = scmp.lt.s32.totalorder %s1398_s24, 3 }
   0xc   : > { %p1492_p6 = por %p178_p3, %p43_p0  ;;  %s1400_s30 = smov [#allocation5]  }
   0xd   : > { %s1740_s27 = scalar_select %p1487_p4, 1, 0 }
   0xe   : > { %s1741_s28 = scalar_select %p1492_p6, 1, 0 }
   0xf   : > { %p1497_p8 = pnand %p1025_p5, %p185_p7  ;;  %s203_s7 = sshll.u32 %s1400_s30, 4  ;;  %s204_s7 = int_to_ptr.vmem [resolvable:$true] %s203_s7 }
  0x10   : > { %s1401_s9 = smov [#allocation7]   ;;  %s1261_s11 = scalar_lea.vmem %s204_s7, 256 }
  0x11   : > { %s1742_s29 = scalar_select %p1497_p8, 1, 0 }
  0x12   : > { %p1155_p9 = pneg %p1497_p8  ;;  %s216_s10 = sshll.u32 %s1401_s9, 4  ;;  %s217_s10 = int_to_ptr.vmem [resolvable:$true] %s216_s10 }
  0x13   : > { %p1262_p13 = scmp.ne.s32.totalorder %s204_s7, %s1261_s11  ;;  %p1269_p5 = scmp.lt.s32.totalorder %s204_s7, %s204_s7 }
  0x14   : > { %p1506_p11 = pnand %p1155_p9, %p1735_p1  ;;  %p1270_p7 = scmp.lt.s32.totalorder %s1261_s11, %s1261_s11 }
  0x16   : > { %p1252_p12 = pneg %p1506_p11  ;;  %p1271_p10 = por %p1270_p7, %p1269_p5 }
  0x18   : > { %p1264_p0 = pnand %p1262_p13, %p1252_p12 }
  0x1a   : > { %p1265_p3 = pneg %p1264_p0 }
  0x1c   : > { %p1272_p9 = pnand %p1271_p10, %p1265_p3 }
  0x1e   : > { %1275 = shalt.err (!%p1272_p9)
}
  0x1f   : > { %s1402_s12 = smov 64   ;;  %s1403_s13 = smov 4  }
  0x20   : > { %s1744_s3 = sld [smem:[#allocation12_spill]]  ;;  %s1287_s16 = scalar_lea.vmem %s217_s10, 256 }
  0x21   : > { %p1288_p1 = scmp.ne.s32.totalorder %s217_s10, %s1287_s16  ;;  %p1295_p2 = scmp.lt.s32.totalorder %s217_s10, %s217_s10 }
  0x22   : > { %p1296_p6 = scmp.lt.s32.totalorder %s1287_s16, %s1287_s16 }
  0x23   : > { %p1290_p13 = pnand %p1288_p1, %p1252_p12 }
  0x24   : > { %p1297_p5 = por %p1296_p6, %p1295_p2 }
  0x25   : > { %p1291_p0 = pneg %p1290_p13 }
  0x26   : > { %1158 = dma.hbm_to_vmem [thread:$0]  (!%p1506_p11), %s1744_s3, 256, %s204_s7, [#allocation6], %s1402_s12, %s1402_s12, %s1403_s13  }
  0x27   : > { %p1298_p10 = pnand %p1297_p5, %p1291_p0 }
  0x29   : > { %1301 = shalt.err (!%p1298_p10)
}
  0x2a   : > { %1161 = dma.hbm_to_vmem [thread:$0]  (!%p1506_p11), %s1732_s4, 256, %s217_s10, [#allocation6], %s1402_s12, %s1402_s12, %s1403_s13  }
  0x2b   : > { %s1529_s19 = sadd.s32 1, %s1398_s24   ;;  %s30_s20 = sadd.s32 1, %s1394_s23 }
  0x2c   : > { %s27_s26 = ssub.s32 %s1398_s24, %s1529_s19  ;;  %p37_p1 = scmp.ne.s32.totalorder %s1394_s23, %s1390_s22 }
  0x2d   : > { %p28_p2 = scmp.eq.s32.totalorder %s27_s26, 0  ;;  %p38_p6 = scmp.eq.s32.totalorder %s1398_s24, 0 }
  0x2e   : > { %p1745_p12 = scmp.eq.s32.totalorder %s1478_s25, 1  ;;  %p1172_p7 = scmp.lt.s32.totalorder %s1398_s24, 2 }
  0x2f   : > { %s1545_s7 = scalar_select %p28_p2, %s1394_s23, %s30_s20  }
  0x30   : > { %p1539_p3 = por %p1745_p12, %p37_p1  ;;  %p39_p9 = por %p38_p6, %p37_p1 }
  0x31   : > { %s233_s8 = sand.u32 1, %s1394_s23   ;;  %s1030_s10 = sshll.u32 %s1398_s24, 7 }
  0x32   : > { %s1746_s30 = scalar_select %p1539_p3, 1, 0 }
  0x33   : > { %s1029_s9 = sshll.u32 %s233_s8, 3  ;;  %s1552_s13 = scalar_lea.hbm %s1728_s0, %s1030_s10 }
  0x34   : > { %s237_s14 = scalar_lea.vmem [#allocation2], %s1029_s9  ;;  %p1554_p11 = pnand %p1172_p7, %p39_p9 }
  0x35   : > { %s244_s15 = sshll.u32 %s237_s14, 4  ;;  %s234_s17 = scalar_lea.sflag [#allocation3], %s233_s8  ;;  %s245_s15 = int_to_ptr.vmem [resolvable:$true] %s244_s15 }
  0x36   : > { %s1302_s18 = scalar_lea.hbm %s1552_s13, 128  ;;  %p1304_p0 = pneg %p1554_p11 }
  0x37   : > { %p1303_p13 = scmp.ne.s32.totalorder %s1552_s13, %s1302_s18  ;;  %s1307_s10 = scalar_lea.hbm %s1728_s0, 256 }
  0x38   : > { %p1308_p1 = scmp.lt.s32.totalorder %s1552_s13, %s1728_s0  ;;  %p1309_p2 = scmp.lt.s32.totalorder %s1307_s10, %s1302_s18 }
  0x39   : > { %p1305_p5 = pnand %p1304_p0, %p1303_p13 }
  0x3a   : > { %p1310_p6 = por %p1309_p2, %p1308_p1 }
  0x3b   : > { %p1306_p10 = pneg %p1305_p5 }
  0x3d   : > { %p1311_p12 = pnand %p1310_p6, %p1306_p10 }
  0x3f   : > { %1314 = shalt.err (!%p1311_p12)
}
  0x40   : > { %s1315_s12 = scalar_lea.vmem %s245_s15, 128  ;;  %s1404_s8 = smov [#allocation2]  }
  0x41   : > { %p1316_p7 = scmp.ne.s32.totalorder %s245_s15, %s1315_s12  ;;  %s1320_s14 = sshll.u32 %s1404_s8, 4  ;;  %s1321_s14 = int_to_ptr.vmem [resolvable:$false] %s1320_s14 }
  0x42   : > { %s1322_s3 = scalar_lea.vmem %s1321_s14, 256  ;;  %p1323_p13 = scmp.lt.s32.totalorder %s245_s15, %s1321_s14 }
  0x43   : > { %p1318_p9 = pnand %p1316_p7, %p1304_p0  ;;  %p1324_p5 = scmp.lt.s32.totalorder %s1322_s3, %s1315_s12 }
  0x45   : > { %p1319_p3 = pneg %p1318_p9  ;;  %p1325_p4 = por %p1324_p5, %p1323_p13 }
  0x47   : > { %p1326_p8 = pnand %p1325_p4, %p1319_p3 }
  0x49   : > { %1329 = shalt.err (!%p1326_p8)
}
  0x4a   : > { %1165 = dma.hbm_to_vmem [thread:$0]  (!%p1554_p11), %s1552_s13, 128, %s245_s15, %s234_s17  }
  0x4b   : > { %p1748_p10 = scmp.ne.s32.totalorder %s1742_s29, 0 }
  0x4c   : > { %s1575_s18 = sand.u32 (!%p1748_p10), 1, %s1390_s22   ;;  %p1749_p4 = scmp.ne.s32.totalorder (!%p1748_p10), %s1740_s27, 0 }
  0x4d   : > { %253 = sbr.rel (%p1748_p10) target bundleno = 1807 (0x70f), region = 44  ;;  %s1032_s20 = sshll.u32 (!%p1748_p10), %s1575_s18, 3 }
  0x4e   : > { %s256_s26 = scalar_lea.sflag (!%p1748_p10), [#allocation3], %s1575_s18  ;;  %s259_s3 = scalar_lea.vmem (!%p1748_p10), [#allocation2], %s1032_s20 }
  0x52   : > { %1373 = dma.done.wait (%p1749_p4), %s256_s26, 128  }
  0x53   : > { %1375 = vsyncadd (%p1749_p4), %s256_s26, 4294967168  ;;  %p1750_p8 = scmp.eq.s32.totalorder %s1478_s25, 0 }
  0x55   : > { %1377 = dma.done.wait (%p1750_p8), [#allocation6], 512   ;;  %p1751_p3 = pmov %p1750_p8 }
  0x56   : > { %vm300_vm0 = vcmask 261120   ;;  %v1589_v0 = vld [vmem:[%s259_s3] sm:$0xff]  ;;  %v1228_v7 = vld [vmem:[#allocation5 + $0x8] sm:$0xff]   ;;  %v1405_v8 = vmov 0.0   ;;  %vm1406_vm1 = vmmov 0   ;;  %v1229_v9 = vld [vmem:[#allocation5] sm:$0xff]  }
  0x57   : > { %1379 = vsyncadd (%p1751_p3), [#allocation6], 4294966784  ;;  %v301_v1 = vsel %vm300_vm0, %v1589_v0, 0.0  ;;  %1079 = vmatprep.subr.bf16.mxu0 %v1405_v8  ;;  %1083 = vmatprep.mubr.msk.bf16.mxu0 %vm1406_vm1, %v1405_v8  ;;  %v1036_v14 = vld [vmem:[%s1729_s1] ss:$0 sm:$0xff]  ;;  %s1407_s16 = smov 120  }
  0x58   : > { %302 = vadd.xlane.f32.xlu0 %v301_v1  ;;  %1080 = vmatpush3.bf16.msra.mxu0 %v1228_v7  ;;  %v1037_v16 = vld [vmem:[%s1730_s2] ss:$0 sm:$0xff]  ;;  %s1408_s17 = smov 96   ;;  %s1409_s10 = smov 88   ;;  %vm393_vm2 = vcmask 64512   ;;  %vm458_vm3 = vcmask 1043456  }
  0x59   : > { %1087 = vmatprep.subr.bf16.mxu1 %v1405_v8  ;;  %1081 = vmatprep.subr.bf16.mxu0 %v1405_v8  ;;  %s1410_s11 = smov 80   ;;  %s1411_s9 = smov 112   ;;  %vm848_vm4 = vcmask 130048   ;;  %vm850_vm5 = vcmask 195584  }
  0x5a   : > { %1089 = vmatprep.mubr.msk.bf16.mxu1 %vm1406_vm1, %v1405_v8  ;;  %s1412_s12 = smov 72   ;;  %s1413_s8 = smov 104  }
  0x5b   : > { %s1414_s14 = smov 64   ;;  %s1415_s26 = smov 56  }
  0x5c   : > { %1082 = vmatpush3.bf16.msra.mxu0 %v1229_v9  ;;  %s1416_s3 = smov 48   ;;  %s1417_s27 = smov 40  }
  0x5d   : > { %1093 = vmatprep.subr.bf16.mxu0 %v1405_v8  ;;  %s1418_s29 = smov 8   ;;  %s1419_s13 = smov 16  }
  0x5e   : > { %s1420_s15 = smov 24   ;;  %p1752_p0 = scmp.ne.s32.totalorder %s1746_s30, 0 }
  0xe1   : > { %v303_v2 = vpop.xlane.xlu0 %302 }
  0xe2   : > { %v305_v3 = vmul.f32 0.03125, %v303_v2 }
  0xe4   : > { %v306_v4 = vsub.f32 %v1589_v0, %v305_v3 }
  0xe6   : > { %v307_v5 = vmul.f32 %v306_v4, %v306_v4 }
  0xe8   : > { %v308_v6 = vsel %vm300_vm0, %v307_v5, 0.0 }
  0xe9   : > { %309 = vadd.xlane.f32.xlu0 %v308_v6 }
 0x172   : > { %v310_v10 = vpop.xlane.xlu0 %309 }
 0x173   : > { %v311_v11 = vmul.f32 0.03125, %v310_v10 }
 0x175   : > { %v312_v12 = vadd.f32 1e-05, %v311_v11 }
 0x177   : > { %1232 = vrsqrt.f32 %v312_v12 }
 0x184   : > { %v1233_v13 = vpop.eup %1232 }
 0x185   : > { %v314_v15 = vmul.f32 %v1233_v13, %v306_v4 }
 0x187   : > { %v321_v17 = vmul.f32 %v1036_v14, %v314_v15 }
 0x189   : > { %v328_v18 = vadd.f32 %v1037_v16, %v321_v17 }
 0x18b   : > { %v329_v19 = vpack.c.bf16 %v328_v18, %v328_v18 }
 0x18d   : > { %1084 = vmatmul.mubr.msk.bf16.vlgmr.msra.gmra.mxu0 %vm300_vm0, %v329_v19 }
 0x18e   : > { %1095 = vmatprep.mubr.msk.bf16.mxu0 %vm1406_vm1, %v1405_v8 }
 0x24d   : > { %v383_v20 = vpop.f32.mrf.mxu0 }
 0x24e   : > { %v1612_v21 = vpack.c.bf16 %v383_v20, %v383_v20 }
 0x24f   : > { %v1085_v22 = vpop.f32.mrf.mxu0 }
 0x250   : > { %502 = vrot.lane.b32.xlu0 %v1612_v21, %s1407_s16  ;;  %391 = vrot.lane.b32.xlu1 %v1612_v21, %s1408_s17 }
 0x251   : > { %v386_v23 = vpop.f32.mrf.mxu0 }
 0x253   : > { %v1086_v24 = vpop.f32.mrf.mxu0 }
 0x254   : > { %504 = vrot.lane.b32.xlu1 %v1612_v21, %s1409_s10  ;;  %s1054_s10 = sshll.u32 %s1478_s25, 7  ;;  %s922_s25 = scalar_lea.sflag [#allocation4], %s1575_s18 }
 0x258   : > { %615 = vrot.lane.b32.xlu1 %v1612_v21, %s1410_s11  ;;  %s295_s11 = scalar_lea.vmem [#allocation8], %s1032_s20 }
 0x25c   : > { %613 = vrot.lane.b32.xlu1 %v1612_v21, %s1411_s9  ;;  %s935_s9 = sshll.u32 %s295_s11, 4  ;;  %s1686_s9 = int_to_ptr.vmem [resolvable:$true] %s935_s9 }
 0x25d   : > { %s1330_s20 = scalar_lea.vmem %s1686_s9, 128 }
 0x25e   : > { %p1331_p11 = scmp.ne.s32.totalorder %s1686_s9, %s1330_s20 }
 0x260   : > { %726 = vrot.lane.b32.xlu1 %v1612_v21, %s1412_s12  ;;  %p1332_p1 = pnand %p1331_p11, %p1752_p0 }
 0x262   : > { %p1333_p2 = pneg %p1332_p1 }
 0x264   : > { %724 = vrot.lane.b32.xlu1 %v1612_v21, %s1413_s8 }
 0x2c2   : > { %v392_v25 = vpop.permute.xlu1 %391  ;;  %v503_v30 = vpop.permute.xlu0 %502 }
 0x2c3   : > { %v398_v26 = vsel %vm393_vm2, %v392_v25, 0 }
 0x2c4   : > { %1088 = vmatpush3.bf16.xpose.msra.mxu1 %v398_v26 }
 0x2c5   : > { %1099 = vmatprep.subr.bf16.mxu1 %v1405_v8 }
 0x2c6   : > { %v505_v27 = vpop.permute.xlu1 %504 }
 0x2c7   : > { %v510_v28 = vsel %vm393_vm2, %v505_v27, 0 }
 0x2ca   : > { %v616_v29 = vpop.permute.xlu1 %615 }
 0x2cb   : > { %1090 = vmatmul.mubr.msk.bf16.vlgmr.msra.gmra.mxu1 %vm393_vm2, %v1612_v21  ;;  %v621_v32 = vsel %vm393_vm2, %v616_v29, 0 }
 0x2cc   : > { %1100 = vmatpush3.bf16.xpose.msra.mxu1 %v510_v28  ;;  %1101 = vmatprep.mubr.msk.bf16.mxu1 %vm1406_vm1, %v1405_v8 }
 0x2cd   : > { %1111 = vmatprep.subr.bf16.mxu1 %v1405_v8 }
 0x2ce   : > { %v614_v31 = vpop.permute.xlu1 %613 }
 0x2d2   : > { %v727_v33 = vpop.permute.xlu1 %726 }
 0x2d3   : > { %1102 = vmatmul.mubr.msk.bf16.vlgmr.msra.gmra.mxu1 %vm393_vm2, %v503_v30  ;;  %v732_v34 = vsel %vm393_vm2, %v727_v33, 0 }
 0x2d4   : > { %1112 = vmatpush3.bf16.xpose.msra.mxu1 %v621_v32  ;;  %1113 = vmatprep.mubr.msk.bf16.mxu1 %vm1406_vm1, %v1405_v8 }
 0x2d5   : > { %1123 = vmatprep.subr.bf16.mxu1 %v1405_v8 }
 0x2d6   : > { %v725_v35 = vpop.permute.xlu1 %724 }
 0x2db   : > { %1114 = vmatmul.mubr.msk.bf16.vlgmr.msra.gmra.mxu1 %vm393_vm2, %v614_v31 }
 0x2dc   : > { %1124 = vmatpush3.bf16.xpose.msra.mxu1 %v732_v34  ;;  %1125 = vmatprep.mubr.msk.bf16.mxu1 %vm1406_vm1, %v1405_v8 }
 0x2dd   : > { %1135 = vmatprep.subr.bf16.mxu1 %v1405_v8 }
 0x2e3   : > { %1126 = vmatmul.mubr.msk.bf16.vlgmr.msra.gmra.mxu1 %vm393_vm2, %v725_v35 }
 0x2e4   : > { %1139 = vmatprep.mubr.msk.bf16.mxu1 %vm1406_vm1, %v1405_v8 }
 0x38b   : > { %v434_v36 = vpop.f32.mrf.mxu1 }
 0x38c   : > { %v440_v37 = vmul.f32 0.17677669, %v434_v36 }
 0x38d   : > { %v1091_v38 = vpop.f32.mrf.mxu1 }
 0x38e   : > { %v441_v39 = vsel %vm393_vm2, %v440_v37, -inf }
 0x38f   : > { %442 = vmax.xlane.f32.xlu1 %v441_v39  ;;  %v437_v40 = vpop.f32.mrf.mxu1 }
 0x391   : > { %v1092_v41 = vpop.f32.mrf.mxu1 }
 0x393   : > { %v546_v42 = vpop.f32.mrf.mxu1 }
 0x394   : > { %v552_v43 = vmul.f32 0.17677669, %v546_v42 }
 0x395   : > { %v1103_v44 = vpop.f32.mrf.mxu1 }
 0x396   : > { %v553_v45 = vsel %vm393_vm2, %v552_v43, -inf }
 0x397   : > { %554 = vmax.xlane.f32.xlu0 %v553_v45  ;;  %v549_v46 = vpop.f32.mrf.mxu1 }
 0x399   : > { %v1104_v47 = vpop.f32.mrf.mxu1 }
 0x39b   : > { %v657_v48 = vpop.f32.mrf.mxu1 }
 0x39c   : > { %v663_v49 = vmul.f32 0.17677669, %v657_v48 }
 0x39d   : > { %v1115_v50 = vpop.f32.mrf.mxu1 }
 0x39e   : > { %v664_v51 = vsel %vm393_vm2, %v663_v49, -inf  ;;  %v1230_v50 = vld [vmem:[#allocation7 + $0x8] sm:$0xff]  }
 0x39f   : > { %665 = vmax.xlane.f32.xlu1 %v664_v51  ;;  %v660_v52 = vpop.f32.mrf.mxu1  ;;  %1136 = vmatpush3.bf16.msra.mxu1 %v1230_v50  ;;  %v1231_v51 = vld [vmem:[#allocation7] sm:$0xff]  }
 0x3a0   : > { %1137 = vmatprep.subr.bf16.mxu1 %v1405_v8 }
 0x3a1   : > { %v1116_v53 = vpop.f32.mrf.mxu1 }
 0x3a3   : > { %v768_v54 = vpop.f32.mrf.mxu1  ;;  %1138 = vmatpush3.bf16.msra.mxu1 %v1231_v51 }
 0x3a4   : > { %v774_v55 = vmul.f32 0.17677669, %v768_v54 }
 0x3a5   : > { %v1127_v56 = vpop.f32.mrf.mxu1 }
 0x3a6   : > { %v775_v57 = vsel %vm393_vm2, %v774_v55, -inf }
 0x3a7   : > { %776 = vmax.xlane.f32.xlu0 %v775_v57  ;;  %v771_v58 = vpop.f32.mrf.mxu1 }
 0x3a9   : > { %v1128_v59 = vpop.f32.mrf.mxu1 }
 0x418   : > { %v443_v60 = vpop.xlane.xlu1 %442 }
 0x419   : > { %v444_v61 = vsub.f32 %v440_v37, %v443_v60 }
 0x41b   : > { %v445_v62 = vmul.f32 1.442695, %v444_v61 }
 0x41d   : > { %1234 = vpow2.f32 %v445_v62 }
 0x420   : > { %v555_v63 = vpop.xlane.xlu0 %554 }
 0x421   : > { %v556_v1 = vsub.f32 %v552_v43, %v555_v63 }
 0x423   : > { %v557_v2 = vmul.f32 1.442695, %v556_v1 }
 0x425   : > { %1236 = vpow2.f32 %v557_v2 }
 0x428   : > { %v666_v13 = vpop.xlane.xlu1 %665 }
 0x429   : > { %v667_v14 = vsub.f32 %v663_v49, %v666_v13 }
 0x42a   : > { %v1235_v3 = vpop.eup %1234 }
 0x42b   : > { %v447_v4 = vsel %vm393_vm2, %v1235_v3, 0.0  ;;  %v668_v15 = vmul.f32 1.442695, %v667_v14 }
 0x42c   : > { %448 = vadd.xlane.f32.xlu1 %v447_v4 }
 0x430   : > { %v777_v5 = vpop.xlane.xlu0 %776 }
 0x431   : > { %v778_v6 = vsub.f32 %v774_v55, %v777_v5 }
 0x432   : > { %v1237_v7 = vpop.eup %1236 }
 0x433   : > { %v779_v9 = vmul.f32 1.442695, %v778_v6  ;;  %v559_v10 = vsel %vm393_vm2, %v1237_v7, 0.0 }
 0x434   : > { %560 = vadd.xlane.f32.xlu0 %v559_v10 }
 0x435   : > { %1238 = vpow2.f32 %v779_v9 }
 0x436   : > { %1240 = vpow2.f32 %v668_v15 }
 0x43d   : > { %453 = vrot.lane.b32.xlu1 %v1612_v21, %s1414_s14  ;;  %s1684_s14 = scalar_lea.hbm %s1734_s6, %s1054_s10 }
 0x442   : > { %v1239_v11 = vpop.eup %1238 }
 0x443   : > { %v781_v12 = vsel %vm393_vm2, %v1239_v11, 0.0  ;;  %v1241_v16 = vpop.eup %1240 }
 0x444   : > { %782 = vadd.xlane.f32.xlu0 %v781_v12  ;;  %v670_v17 = vsel %vm393_vm2, %v1241_v16, 0.0 }
 0x45a   : > { %565 = vrot.lane.b32.xlu0 %v1612_v21, %s1415_s26  ;;  %s1421_s26 = smov [#allocation8]  }
 0x461   : > { %671 = vadd.xlane.f32.xlu1 %v670_v17 }
 0x472   : > { %676 = vrot.lane.b32.xlu1 %v1612_v21, %s1416_s3  ;;  %s1334_s3 = sshll.u32 %s1421_s26, 4  ;;  %s1335_s3 = int_to_ptr.vmem [resolvable:$false] %s1334_s3 }
 0x473   : > { %p1337_p6 = scmp.lt.s32.totalorder %s1686_s9, %s1335_s3 }
 0x476   : > { %787 = vrot.lane.b32.xlu1 %v1612_v21, %s1417_s27  ;;  %s1336_s27 = scalar_lea.vmem %s1335_s3, 256 }
 0x477   : > { %p1338_p12 = scmp.lt.s32.totalorder %s1336_s27, %s1330_s20 }
 0x479   : > { %p1339_p7 = por %p1338_p12, %p1337_p6 }
 0x47b   : > { %p1340_p9 = pnand %p1339_p7, %p1333_p2 }
 0x4b5   : > { %v449_v18 = vpop.xlane.xlu1 %448 }
 0x4b6   : > { %1242 = vrcp.f32 %v449_v18 }
 0x4b9   : > { %v454_v19 = vpop.permute.xlu1 %453 }
 0x4ba   : > { %v460_v20 = vsel %vm458_vm3, %v454_v19, 0 }
 0x4bb   : > { %1094 = vmatpush3.bf16.msra.mxu0 %v460_v20 }
 0x4bc   : > { %1105 = vmatprep.subr.bf16.mxu0 %v1405_v8 }
 0x4bd   : > { %v561_v22 = vpop.xlane.xlu0 %560 }
 0x4be   : > { %1244 = vrcp.f32 %v561_v22 }
 0x4c3   : > { %v1243_v23 = vpop.eup %1242 }
 0x4c4   : > { %v451_v24 = vmul.f32 %v1243_v23, %v1235_v3  ;;  %v1049_v3 = vld [vmem:[%s1733_s5] ss:$0 sm:$0xff] }
 0x4c6   : > { %v452_v25 = vpack.c.bf16 %v451_v24, %v451_v24 }
 0x4c8   : > { %1096 = vmatmul.mubr.msk.bf16.vlgmr.msra.gmra.mxu0 %vm393_vm2, %v452_v25 }
 0x4c9   : > { %1107 = vmatprep.mubr.msk.bf16.mxu0 %vm1406_vm1, %v1405_v8 }
 0x4cb   : > { %v1245_v21 = vpop.eup %1244 }
 0x4cc   : > { %v563_v27 = vmul.f32 %v1245_v21, %v1237_v7 }
 0x4cd   : > { %v783_v26 = vpop.xlane.xlu0 %782 }
 0x4ce   : > { %v564_v30 = vpack.c.bf16 %v563_v27, %v563_v27 }
 0x4d1   : > { %v566_v28 = vpop.permute.xlu0 %565 }
 0x4d2   : > { %v571_v29 = vsel %vm458_vm3, %v566_v28, 0 }
 0x4d3   : > { %1106 = vmatpush3.bf16.msra.mxu0 %v571_v29 }
 0x4d4   : > { %1117 = vmatprep.subr.bf16.mxu0 %v1405_v8 }
 0x4d6   : > { %1108 = vmatmul.mubr.msk.bf16.vlgmr.msra.gmra.mxu0 %vm393_vm2, %v564_v30 }
 0x4d7   : > { %1119 = vmatprep.mubr.msk.bf16.mxu0 %vm1406_vm1, %v1405_v8 }
 0x4ea   : > { %v672_v31 = vpop.xlane.xlu1 %671 }
 0x4eb   : > { %1246 = vrcp.f32 %v672_v31 }
 0x4ec   : > { %1248 = vrcp.f32 %v783_v26 }
 0x4ee   : > { %v677_v32 = vpop.permute.xlu1 %676 }
 0x4ef   : > { %v682_v33 = vsel %vm458_vm3, %v677_v32, 0 }
 0x4f0   : > { %1118 = vmatpush3.bf16.msra.mxu0 %v682_v33 }
 0x4f1   : > { %1129 = vmatprep.subr.bf16.mxu0 %v1405_v8 }
 0x4f2   : > { %v788_v36 = vpop.permute.xlu1 %787 }
 0x4f3   : > { %v793_v39 = vsel %vm458_vm3, %v788_v36, 0 }
 0x4f8   : > { %v1247_v34 = vpop.eup %1246 }
 0x4f9   : > { %v674_v35 = vmul.f32 %v1247_v34, %v1241_v16  ;;  %v1249_v38 = vpop.eup %1248 }
 0x4fa   : > { %v785_v40 = vmul.f32 %v1249_v38, %v1239_v11 }
 0x4fb   : > { %v675_v37 = vpack.c.bf16 %v674_v35, %v674_v35 }
 0x4fc   : > { %v786_v41 = vpack.c.bf16 %v785_v40, %v785_v40 }
 0x4fd   : > { %1120 = vmatmul.mubr.msk.bf16.vlgmr.msra.gmra.mxu0 %vm393_vm2, %v675_v37 }
 0x4fe   : > { %1130 = vmatpush3.bf16.msra.mxu0 %v793_v39  ;;  %1131 = vmatprep.mubr.msk.bf16.mxu0 %vm1406_vm1, %v1405_v8 }
 0x505   : > { %1132 = vmatmul.mubr.msk.bf16.vlgmr.msra.gmra.mxu0 %vm393_vm2, %v786_v41 }
 0x588   : > { %v496_v42 = vpop.f32.mrf.mxu0 }
 0x58a   : > { %v1097_v43 = vpop.f32.mrf.mxu0 }
 0x58c   : > { %v499_v44 = vpop.f32.mrf.mxu0 }
 0x58e   : > { %v1098_v45 = vpop.f32.mrf.mxu0 }
 0x596   : > { %v607_v46 = vpop.f32.mrf.mxu0 }
 0x597   : > { %836 = vrot.lane.b32.xlu0 %v607_v46, %s1418_s29 }
 0x598   : > { %v1109_v47 = vpop.f32.mrf.mxu0 }
 0x59a   : > { %v610_v48 = vpop.f32.mrf.mxu0 }
 0x59c   : > { %v1110_v49 = vpop.f32.mrf.mxu0 }
 0x5bd   : > { %v718_v52 = vpop.f32.mrf.mxu0 }
 0x5be   : > { %840 = vrot.lane.b32.xlu1 %v718_v52, %s1419_s13 }
 0x5bf   : > { %v1121_v53 = vpop.f32.mrf.mxu0 }
 0x5c1   : > { %v721_v54 = vpop.f32.mrf.mxu0 }
 0x5c3   : > { %v1122_v55 = vpop.f32.mrf.mxu0 }
 0x5c5   : > { %v829_v56 = vpop.f32.mrf.mxu0 }
 0x5c6   : > { %844 = vrot.lane.b32.xlu0 %v829_v56, %s1420_s15 }
 0x5c7   : > { %v1133_v57 = vpop.f32.mrf.mxu0 }
 0x5c9   : > { %v832_v58 = vpop.f32.mrf.mxu0 }
 0x5cb   : > { %v1134_v59 = vpop.f32.mrf.mxu0 }
 0x609   : > { %v837_v60 = vpop.permute.xlu0 %836 }
 0x60a   : > { %v847_v8 = vsel %vm393_vm2, %v496_v42, %v837_v60 }
 0x630   : > { %v841_v61 = vpop.permute.xlu1 %840 }
 0x631   : > { %v849_v62 = vsel %vm848_vm4, %v847_v8, %v841_v61 }
 0x638   : > { %v845_v63 = vpop.permute.xlu0 %844 }
 0x639   : > { %v851_v1 = vsel %vm850_vm5, %v849_v62, %v845_v63 }
 0x63a   : > { %v852_v2 = vpack.c.bf16 %v851_v1, %v851_v1 }
 0x63c   : > { %1140 = vmatmul.mubr.msk.bf16.vlgmr.msra.gmra.mxu1 %vm300_vm0, %v852_v2 }
 0x6fc   : > { %v913_v4 = vpop.f32.mrf.mxu1 }
 0x6fd   : > { %v914_v5 = vadd.f32 %v1049_v3, %v913_v4 }
 0x6fe   : > { %v1141_v6 = vpop.f32.mrf.mxu1 }
 0x6ff   : > { %v919_v7 = vadd.f32 %v914_v5, %v1589_v0 }
 0x700   : > { %v916_v9 = vpop.f32.mrf.mxu1 }
 0x701   : > { %920 = vst.msk [vmem:[%s295_s11] sm:$0xff] %vm300_vm0, %v919_v7 }
 0x702   : > { %v1142_v10 = vpop.f32.mrf.mxu1 }
 0x703   : > { %1343 = shalt.err (!%p1340_p9)
}
 0x704   : > { %s1344_s29 = scalar_lea.hbm %s1684_s14, 128  ;;  %s1348_s15 = scalar_lea.hbm %s1734_s6, 256 }
 0x705   : > { %p1345_p13 = scmp.ne.s32.totalorder %s1684_s14, %s1344_s29  ;;  %p1349_p4 = scmp.lt.s32.totalorder %s1684_s14, %s1734_s6 }
 0x706   : > { %p1350_p8 = scmp.lt.s32.totalorder %s1348_s15, %s1344_s29 }
 0x707   : > { %p1346_p5 = pnand %p1345_p13, %p1752_p0 }
 0x708   : > { %p1351_p3 = por %p1350_p8, %p1349_p4 }
 0x709   : > { %p1347_p10 = pneg %p1346_p5 }
 0x70b   : > { %p1352_p11 = pnand %p1351_p3, %p1347_p10 }
 0x70d   : > { %1355 = shalt.err (!%p1352_p11)
}
 0x70e   : > { %1153 = dma.vmem_to_hbm [thread:$0]  (%p1752_p0), %s1686_s9, 128, %s1684_s14, %s922_s25  }
 0x70f PF: > { %s947_s10 = sand.u32 1, %s1386_s21   ;;  %p1753_p1 = scmp.ne.s32.totalorder %s1741_s28, 0 }
 0x710   : > { %p1754_p2 = scmp.ge.s32.totalorder %s1398_s24, 2  ;;  %s948_s11 = scalar_lea.sflag [#allocation4], %s947_s10 }
 0x712   : > { %p1167_p6 = pnand %p1754_p2, %p1753_p1 }
 0x714   : > { %p1168_p12 = pneg %p1167_p6 }
 0x716   : > { %1381 = dma.done.wait (%p1168_p12), %s948_s11, 128  }
 0x717   : > { %1383 = vsyncadd (%p1168_p12), %s948_s11, 4294967168  ;;  %p20_p7 = scmp.ge.s32.totalorder %s1529_s19, 4   ;;  %s1755_s21 = smov %s1390_s22 }
 0x718   : > { %s1756_s22 = smov %s1394_s23  ;;  %s1757_s23 = smov %s1545_s7 }
 0x719   : > { %s1758_s24 = smov %s1529_s19  ;;  %22 = sbr.rel (!%p20_p7) target bundleno = 8 (0x8), region = 97 }
 0x71e   :  { %953 = vsyncpa [#allocation3], 1 }
 0x71f   :  { %955 = vsyncpa [#allocation3 + $0x1], 1 }
 0x720   :  { %956 = vsyncpa [#allocation6], 1 }
 0x721   :  { %957 = vsyncpa [#allocation4], 1 }
 0x722   :  { %959 = vsyncpa [#allocation4 + $0x1], 1 }

</bundles_post_ra>
